<compile_context>
chip_gen: v7x
topology: tpu7x:2x2x1
jax: 0.10.0
libtpu: 0.0.40
codegen_flags: <defaults>
</compile_context>

<pallas_src>
import functools

import jax
import jax.numpy as jnp
from jax.experimental import pallas as pl
from jax.experimental.pallas import tpu as pltpu

NEG_SLOPE = 0.2      # PyG GATConv default negative_slope
NEG_INF = -1e30
LANE = 128
VMEM_LIMIT = 32 << 20   # ample for these shapes; within scoped limits on v5e/v6e/v7x


# ----------------------------------------------------------------------------- kernels

def _project_kernel(x_ref, w_ref, acat_ref, h_ref, s_ref):
    """h = x @ W (bf16 MXU);  scores = h @ [a_dst | a_src] -> [N, 2] (single fused matmul)."""
    xb = x_ref[...].astype(jnp.bfloat16)
    wb = w_ref[...].astype(jnp.bfloat16)
    h = jnp.dot(xb, wb, preferred_element_type=jnp.float32)          # [N, C] f32 acc
    hb = h.astype(jnp.bfloat16)
    s_ref[...] = jnp.dot(hb, acat_ref[...].astype(jnp.bfloat16),
                         preferred_element_type=jnp.float32)          # [N, 2]
    h_ref[...] = hb                                                   # keep h in bf16 for aggregation


def _attend_kernel(sdst_ref, ssrc_ref, h_ref, adj_ref, b_ref, o_ref, *, apply_elu):
    """One row-block (TM target nodes) of masked-softmax attention + aggregation."""
    raw = sdst_ref[...] + ssrc_ref[...]                               # [TM, N] broadcast
    e = jnp.where(raw > 0, raw, NEG_SLOPE * raw)                      # LeakyReLU
    # int8 adjacency; widen then compare (cheap VPU, avoids narrow-int select corner cases)
    mask = adj_ref[...].astype(jnp.float32) > 0.0
    e = jnp.where(mask, e, NEG_INF)                                   # non-edges -> -inf
    m = jnp.max(e, axis=-1, keepdims=True)                            # [TM, 1]
    p = jnp.exp(e - m)                                                # [TM, N] f32 (non-edges -> 0)
    row_sum = jnp.sum(p, axis=-1, keepdims=True)                      # [TM, 1]
    agg = jnp.dot(p.astype(jnp.bfloat16), h_ref[...],
                  preferred_element_type=jnp.float32)                 # [TM, C], bf16 MXU
    out = agg * pl.reciprocal(row_sum, approx=True) + b_ref[...]      # deferred normalization
    if apply_elu:                                                     # fused ELU epilogue (layer 1)
        out = jnp.where(out > 0, out, jnp.exp(jnp.minimum(out, 0.0)) - 1.0)
    o_ref[...] = out.astype(o_ref.dtype)


# ----------------------------------------------------------------------------- wrappers

def _pick_row_block(n):
    # Multiples of 32 keep int8 adj tiles aligned to the (32, 128) packed layout.
    for tm in (512, 256, 128, 64, 32):
        if n % tm == 0:
            return tm
    return n  # full-array fallback (always a legal block shape)


def _project(x, w, acat):
    n = x.shape[0]
    c = w.shape[1]
    vmem = pl.BlockSpec(memory_space=pltpu.MemorySpace.VMEM)
    return pl.pallas_call(
        _project_kernel,
        out_shape=(jax.ShapeDtypeStruct((n, c), jnp.bfloat16),
                   jax.ShapeDtypeStruct((n, 2), jnp.float32)),
        in_specs=[vmem, vmem, vmem],
        out_specs=(vmem, vmem),
        compiler_params=pltpu.CompilerParams(vmem_limit_bytes=VMEM_LIMIT),
    )(x, w, acat)


def _attend(scores, h, adj, bias, *, apply_elu, out_dtype):
    n, c = h.shape
    s_dst = scores[:, 0:1]            # [N, 1]  target-side score
    s_src = scores[:, 1:2].T          # [1, N]  source-side score (trivial XLA relabel; glue)
    tm = _pick_row_block(n)
    kernel = functools.partial(_attend_kernel, apply_elu=apply_elu)
    return pl.pallas_call(
        kernel,
        out_shape=jax.ShapeDtypeStruct((n, c), out_dtype),
        grid=(n // tm,),
        in_specs=[pl.BlockSpec((tm, 1), lambda i: (i, 0)),   # s_dst: row block
                  pl.BlockSpec((1, n), lambda i: (0, 0)),    # s_src: full, resident
                  pl.BlockSpec((n, c), lambda i: (0, 0)),    # h (bf16): full, resident
                  pl.BlockSpec((tm, n), lambda i: (i, 0)),   # adj (int8): row block, pipelined
                  pl.BlockSpec((1, c), lambda i: (0, 0))],   # bias
        out_specs=pl.BlockSpec((tm, c), lambda i: (i, 0)),
        compiler_params=pltpu.CompilerParams(
            dimension_semantics=("parallel",),               # megacore-shardable row blocks
            vmem_limit_bytes=VMEM_LIMIT),
    )(s_dst, s_src, h, adj, bias)


def gatnet_forward(feature, edge_index, params):
    """feature: [N, F_in] f32; edge_index: [2, E] int32 (row0=source, row1=target)."""
    n = feature.shape[0]
    # Glue: densify edge_index into int8 adj[target, source] with self-loops (PyG default).
    # Precondition: every target row has >=1 edge (self-loops guarantee it).
    adj = jnp.zeros((n, n), jnp.int8)
    adj = adj.at[edge_index[1], edge_index[0]].set(jnp.int8(1))
    adj = adj.at[jnp.arange(n), jnp.arange(n)].set(jnp.int8(1))

    (w1, as1, ad1, b1, w2, as2, ad2, b2) = params
    out_size = w2.shape[1]

    # Layer-2 channels zero-padded to a lane-dense multiple of 128 (exact: padded channels stay 0).
    c2 = ((out_size + LANE - 1) // LANE) * LANE
    pad = c2 - out_size
    w2p = jnp.pad(w2, ((0, 0), (0, pad)))
    as2p = jnp.pad(as2, ((0, 0), (0, pad)))
    ad2p = jnp.pad(ad2, ((0, 0), (0, pad)))
    b2p = jnp.pad(b2, ((0, 0), (0, pad)))

    # Fuse att_dst / att_src into a single [C, 2] projection matrix.
    acat1 = jnp.concatenate([ad1.T, as1.T], axis=1)          # [H, 2]
    acat2 = jnp.concatenate([ad2p.T, as2p.T], axis=1)        # [C2, 2]

    h1, s1 = _project(feature, w1, acat1)
    # conv1 + fused ELU -> [N, H] stored in bf16 (exactly what layer-2 projection consumes)
    x1 = _attend(s1, h1, adj, b1, apply_elu=True, out_dtype=jnp.bfloat16)
    h2, s2 = _project(x1, w2p, acat2)
    out_p = _attend(s2, h2, adj, b2p, apply_elu=False, out_dtype=jnp.float32)  # conv2 -> [N, C2]
    return out_p[:, :out_size]


# ----------------------------------------------------------------------------- reference

def _ref_forward(feature, edge_index, params):
    """Pure-JAX reference with the same precision strategy (bf16 MXU operands, f32 accum)."""
    n = feature.shape[0]
    adj = jnp.zeros((n, n), jnp.float32)
    adj = adj.at[edge_index[1], edge_index[0]].set(1.0)
    adj = adj.at[jnp.arange(n), jnp.arange(n)].set(1.0)
    (w1, as1, ad1, b1, w2, as2, ad2, b2) = params

    def project(x, w, acat):
        h = jnp.dot(x.astype(jnp.bfloat16), w.astype(jnp.bfloat16),
                    preferred_element_type=jnp.float32)
        hb = h.astype(jnp.bfloat16)
        s = jnp.dot(hb, acat.astype(jnp.bfloat16), preferred_element_type=jnp.float32)
        return hb, s

    def attend(s, h, b, elu):
        raw = s[:, 0:1] + s[:, 1:2].T
        e = jnp.where(raw > 0, raw, NEG_SLOPE * raw)
        e = jnp.where(adj > 0, e, NEG_INF)
        m = jnp.max(e, axis=-1, keepdims=True)
        p = jnp.exp(e - m)
        row_sum = jnp.sum(p, axis=-1, keepdims=True)
        agg = jnp.dot(p.astype(jnp.bfloat16), h, preferred_element_type=jnp.float32)
        out = agg / row_sum + b
        if elu:
            out = jnp.where(out > 0, out, jnp.exp(jnp.minimum(out, 0.0)) - 1.0)
        return out

    acat1 = jnp.concatenate([ad1.T, as1.T], axis=1)
    acat2 = jnp.concatenate([ad2.T, as2.T], axis=1)
    h1, s1 = project(feature, w1, acat1)
    x1 = attend(s1, h1, b1, True)
    h2, s2 = project(x1, w2, acat2)
    return attend(s2, h2, b2, False)


# ----------------------------------------------------------------------------- params / demo

def init_params(key, input_size, hidden_size, output_size):
    """Deterministic glorot-uniform weights, zero biases (shapes per GATConv, heads=1)."""
    ks = jax.random.split(key, 6)

    def glorot(k, shape):
        fan_in, fan_out = shape[-2], shape[-1]
        lim = jnp.sqrt(6.0 / (fan_in + fan_out))
        return jax.random.uniform(k, shape, jnp.float32, -lim, lim)

    w1 = glorot(ks[0], (input_size, hidden_size))
    as1 = glorot(ks[1], (1, hidden_size))                    # att_src
    ad1 = glorot(ks[2], (1, hidden_size))                    # att_dst
    b1 = jnp.zeros((1, hidden_size), jnp.float32)
    w2 = glorot(ks[3], (hidden_size, output_size))
    as2 = glorot(ks[4], (1, output_size))
    ad2 = glorot(ks[5], (1, output_size))
    b2 = jnp.zeros((1, output_size), jnp.float32)
    return (w1, as1, ad1, b1, w2, as2, ad2, b2)


if __name__ == "__main__":
    N, INPUT_SIZE, HIDDEN_SIZE, OUTPUT_SIZE = 256, 16, 128, 8

    key = jax.random.PRNGKey(0)
    k_feat, k_params = jax.random.split(key)

    feature = jax.random.normal(k_feat, (N, INPUT_SIZE), jnp.float32)

    # Deterministic graph: bidirectional ring over N nodes (E = 2N edges).
    src = jnp.concatenate([jnp.arange(N), (jnp.arange(N) + 1) % N]).astype(jnp.int32)
    dst = jnp.concatenate([(jnp.arange(N) + 1) % N, jnp.arange(N)]).astype(jnp.int32)
    edge_index = jnp.stack([src, dst])                       # [2, 512]

    params = init_params(k_params, INPUT_SIZE, HIDDEN_SIZE, OUTPUT_SIZE)

    out = gatnet_forward(feature, edge_index, params)
    out = jax.block_until_ready(out)

    ref = _ref_forward(feature, edge_index, params)
    assert out.shape == (N, OUTPUT_SIZE)
    assert jnp.allclose(out, ref, atol=5e-3, rtol=5e-3), "Pallas kernel mismatch vs reference"

    print("KERNEL_OK")
</pallas_src>

<mosaic_0001>
module attributes {stable_mosaic.version = 11 : i64} {
  func.func @_project_kernel(%arg0: memref<256x16xf32, #tpu.memory_space<vmem>>, %arg1: memref<16x128xf32, #tpu.memory_space<vmem>>, %arg2: memref<128x2xf32, #tpu.memory_space<vmem>>, %arg3: memref<256x128xbf16, #tpu.memory_space<vmem>>, %arg4: memref<256x2xf32, #tpu.memory_space<vmem>>) attributes {dimension_semantics = [], scalar_prefetch = 0 : i64, scratch_operands = 0 : i64, tpu.core_type = #tpu.core_type<tc>} {
    %c0 = arith.constant 0 : index
    %c0_0 = arith.constant 0 : index
    %0 = vector.load %arg0[%c0, %c0_0] : memref<256x16xf32, #tpu.memory_space<vmem>>, vector<256x16xf32>
    %1 = arith.truncf %0 : vector<256x16xf32> to vector<256x16xbf16>
    %c0_1 = arith.constant 0 : index
    %c0_2 = arith.constant 0 : index
    %2 = vector.load %arg1[%c0_1, %c0_2] : memref<16x128xf32, #tpu.memory_space<vmem>>, vector<16x128xf32>
    %3 = arith.truncf %2 : vector<16x128xf32> to vector<16x128xbf16>
    %cst = arith.constant dense<0.000000e+00> : vector<256x128xf32>
    %4 = tpu.matmul %1, %3, %cst {dimension_numbers = #tpu.dot_dimension_numbers<[1], [0], [0], [1], [0, 0, 1, 1], [], []>} : vector<256x16xbf16>, vector<16x128xbf16>, vector<256x128xf32> -> vector<256x128xf32>
    %5 = arith.truncf %4 : vector<256x128xf32> to vector<256x128xbf16>
    %c0_3 = arith.constant 0 : index
    %c0_4 = arith.constant 0 : index
    %6 = vector.load %arg2[%c0_3, %c0_4] : memref<128x2xf32, #tpu.memory_space<vmem>>, vector<128x2xf32>
    %7 = arith.truncf %6 : vector<128x2xf32> to vector<128x2xbf16>
    %cst_5 = arith.constant dense<0.000000e+00> : vector<256x2xf32>
    %8 = tpu.matmul %5, %7, %cst_5 {dimension_numbers = #tpu.dot_dimension_numbers<[1], [0], [0], [1], [0, 0, 1, 1], [], []>} : vector<256x128xbf16>, vector<128x2xbf16>, vector<256x2xf32> -> vector<256x2xf32>
    %c0_6 = arith.constant 0 : index
    %c0_7 = arith.constant 0 : index
    %9 = vector.load %arg4[%c0_6, %c0_7] : memref<256x2xf32, #tpu.memory_space<vmem>>, vector<256x2xf32>
    tpu.vector_store %arg4[%c0_6, %c0_7], %8 {strides = array<i32>} : memref<256x2xf32, #tpu.memory_space<vmem>>, vector<256x2xf32>,
    %c0_8 = arith.constant 0 : index
    %c0_9 = arith.constant 0 : index
    %10 = vector.load %arg3[%c0_8, %c0_9] : memref<256x128xbf16, #tpu.memory_space<vmem>>, vector<256x128xbf16>
    tpu.vector_store %arg3[%c0_8, %c0_9], %5 {strides = array<i32>} : memref<256x128xbf16, #tpu.memory_space<vmem>>, vector<256x128xbf16>,
    return
  }
}

</mosaic_0001>

<bundles_post_ra>
// kernel: tpu_custom_call.1
= control target key start
LH: loop header
LB: loop body
LE: loop exit
PB: predicated region body
PF: predicated region fallthrough
CT: control target
= control target key end

     0   :  { %vm69_vm0 = vcmask 130048   ;;  %s1352_s0 = inlined_call_operand.vmem [shape: f32[256,16], index: 0, kind: input, shape index: {}]   ;;  %s1353_s1 = inlined_call_operand.vmem [shape: f32[16,128], index: 1, kind: input, shape index: {}]   ;;  %s1354_s2 = inlined_call_operand.vmem [shape: f32[128,2], index: 2, kind: input, shape index: {}]   ;;  %s1355_s3 = inlined_call_operand.hbm [shape: bf16[256,128], index: 3, kind: output, shape index: {0}]   ;;  %s1356_s4 = inlined_call_operand.vmem [shape: f32[256,2], index: 4, kind: output, shape index: {1}]  }
   0x1   :  { %v66_v0 = vld [vmem:[%s1353_s1] sm:$0xff]  ;;  %v67_v1 = vld [vmem:[%s1353_s1 + $0x8] sm:$0xff]  ;;  %v20_v5 = vld [vmem:[%s1352_s0 + $0x10] sm:$0xff] }
   0x2   :  { %v18_v2 = vld [vmem:[%s1352_s0] sm:$0xff]  ;;  %v68_v3 = vpack.c.bf16 %v67_v1, %v66_v0  ;;  %v19_v4 = vld [vmem:[%s1352_s0 + $0x8] sm:$0xff]  ;;  %v21_v6 = vld [vmem:[%s1352_s0 + $0x18] sm:$0xff] }
   0x3   :  { %v50_v7 = vpack.c.bf16 %v19_v4, %v18_v2  ;;  %v22_v8 = vld [vmem:[%s1352_s0 + $0x20] sm:$0xff]  ;;  %v23_v9 = vld [vmem:[%s1352_s0 + $0x28] sm:$0xff]  ;;  %v51_v10 = vpack.c.bf16 %v21_v6, %v20_v5  ;;  %v24_v12 = vld [vmem:[%s1352_s0 + $0x30] sm:$0xff] }
   0x4   :  { %893 = vmatprep.subr.bf16.mxu0 %v68_v3  ;;  %v52_v11 = vpack.c.bf16 %v23_v9, %v22_v8  ;;  %v25_v13 = vld [vmem:[%s1352_s0 + $0x38] sm:$0xff]  ;;  %v26_v14 = vld [vmem:[%s1352_s0 + $0x40] sm:$0xff]  ;;  %v27_v15 = vld [vmem:[%s1352_s0 + $0x48] sm:$0xff] }
   0x5   :  { %894 = vmatpush3.bf16.msra.mxu0 %v68_v3  ;;  %895 = vmatprep.mubr.msk.bf16.mxu0 %vm69_vm0, %v50_v7  ;;  %v53_v16 = vpack.c.bf16 %v25_v13, %v24_v12  ;;  %v295_v17 = vld [vmem:[%s1354_s2] sm:$0xff]  ;;  %v296_v18 = vld [vmem:[%s1354_s2 + $0x8] sm:$0xff]  ;;  %v54_v19 = vpack.c.bf16 %v27_v15, %v26_v14  ;;  %v297_v21 = vld [vmem:[%s1354_s2 + $0x10] sm:$0xff] }
   0x6   :  { %v311_v20 = vpack.c.bf16 %v296_v18, %v295_v17  ;;  %v298_v22 = vld [vmem:[%s1354_s2 + $0x18] sm:$0xff]  ;;  %v299_v24 = vld [vmem:[%s1354_s2 + $0x20] sm:$0xff]  ;;  %v300_v25 = vld [vmem:[%s1354_s2 + $0x28] sm:$0xff] }
   0x7   :  { %v312_v23 = vpack.c.bf16 %v298_v22, %v297_v21  ;;  %v28_v26 = vld [vmem:[%s1352_s0 + $0x50] sm:$0xff]  ;;  %v29_v27 = vld [vmem:[%s1352_s0 + $0x58] sm:$0xff] }
   0x8   :  { %896 = vmatmul.mubr.msk.bf16.vlgmr.msra.gmra.mrb[0].mxu0 %vm69_vm0, %v51_v10  ;;  %927 = vmatprep.subr.bf16.mxu0 %v311_v20 }
   0x9   :  { %899 = vmatprep.mubr.msk.bf16.mxu0 %vm69_vm0, %v52_v11  ;;  %975 = vmatprep.subr.bf16.mxu1 %v311_v20 }
   0xa   :  { %983 = vmatpush3.bf16.msra.mxu1 %v311_v20  ;;  %928 = vmatpush3.bf16.msra.mxu0 %v311_v20 }
  0x10   :  { %900 = vmatmul.mubr.msk.bf16.gmra.mrb[4].mxu0 %vm69_vm0, %v53_v16 }
  0x11   :  { %903 = vmatprep.mubr.msk.bf16.mxu0 %vm69_vm0, %v54_v19 }
  0x12   :  { %10 = vsyncpa [#allocation3], 0  ;;  %v30_v28 = vld [vmem:[%s1352_s0 + $0x60] sm:$0xff]  ;;  %v31_v29 = vld [vmem:[%s1352_s0 + $0x68] sm:$0xff]  ;;  %929 = vmatprep.subr.bf16.mxu0 %v312_v23  ;;  %v313_v30 = vpack.c.bf16 %v300_v25, %v299_v24  ;;  %976 = vmatprep.subr.bf16.mxu1 %v312_v23  ;;  %v55_v33 = vpack.c.bf16 %v29_v27, %v28_v26 }
  0x13   :  { %v301_v31 = vld [vmem:[%s1354_s2 + $0x30] sm:$0xff]  ;;  %v302_v32 = vld [vmem:[%s1354_s2 + $0x38] sm:$0xff]  ;;  %984 = vmatpush3.bf16.msra.mxu1 %v312_v23  ;;  %v56_v34 = vpack.c.bf16 %v31_v29, %v30_v28  ;;  %930 = vmatpush3.bf16.msra.mxu0 %v312_v23  ;;  %v303_v36 = vld [vmem:[%s1354_s2 + $0x40] sm:$0xff] }
  0x14   :  { %977 = vmatprep.subr.bf16.mxu1 %v313_v30  ;;  %931 = vmatprep.subr.bf16.mxu0 %v313_v30  ;;  %v314_v35 = vpack.c.bf16 %v302_v32, %v301_v31  ;;  %v304_v37 = vld [vmem:[%s1354_s2 + $0x48] sm:$0xff]  ;;  %v32_v38 = vld [vmem:[%s1352_s0 + $0x70] sm:$0xff]  ;;  %v33_v39 = vld [vmem:[%s1352_s0 + $0x78] sm:$0xff] }
  0x15   :  { %v34_v40 = vld [vmem:[%s1352_s0 + $0x80] sm:$0xff]  ;;  %v35_v41 = vld [vmem:[%s1352_s0 + $0x88] sm:$0xff]  ;;  %v315_v42 = vpack.c.bf16 %v304_v37, %v303_v36  ;;  %v305_v43 = vld [vmem:[%s1354_s2 + $0x50] sm:$0xff]  ;;  %v57_v45 = vpack.c.bf16 %v33_v39, %v32_v38 }
  0x16   :  { %v306_v44 = vld [vmem:[%s1354_s2 + $0x58] sm:$0xff]  ;;  %v58_v46 = vpack.c.bf16 %v35_v41, %v34_v40  ;;  %v307_v48 = vld [vmem:[%s1354_s2 + $0x60] sm:$0xff]  ;;  %v308_v49 = vld [vmem:[%s1354_s2 + $0x68] sm:$0xff] }
  0x17   :  { %985 = vmatpush3.bf16.msra.mxu1 %v313_v30  ;;  %932 = vmatpush3.bf16.msra.mxu0 %v313_v30  ;;  %v316_v47 = vpack.c.bf16 %v306_v44, %v305_v43  ;;  %v36_v50 = vld [vmem:[%s1352_s0 + $0x90] sm:$0xff]  ;;  %v37_v51 = vld [vmem:[%s1352_s0 + $0x98] sm:$0xff]  ;;  %v38_v52 = vld [vmem:[%s1352_s0 + $0xa0] sm:$0xff]  ;;  %v317_v54 = vpack.c.bf16 %v308_v49, %v307_v48 }
  0x18   :  { %904 = vmatmul.mubr.msk.bf16.gmra.mrb[8].mxu0 %vm69_vm0, %v55_v33  ;;  %933 = vmatprep.subr.bf16.mxu0 %v314_v35  ;;  %v39_v53 = vld [vmem:[%s1352_s0 + $0xa8] sm:$0xff]  ;;  %v59_v55 = vpack.c.bf16 %v37_v51, %v36_v50  ;;  %v40_v57 = vld [vmem:[%s1352_s0 + $0xb0] sm:$0xff]  ;;  %v41_v58 = vld [vmem:[%s1352_s0 + $0xb8] sm:$0xff] }
  0x19   :  { %907 = vmatprep.mubr.msk.bf16.mxu0 %vm69_vm0, %v56_v34  ;;  %978 = vmatprep.subr.bf16.mxu1 %v314_v35  ;;  %v60_v56 = vpack.c.bf16 %v39_v53, %v38_v52  ;;  %v42_v59 = vld [vmem:[%s1352_s0 + $0xc0] sm:$0xff]  ;;  %v43_v60 = vld [vmem:[%s1352_s0 + $0xc8] sm:$0xff]  ;;  %v61_v61 = vpack.c.bf16 %v41_v58, %v40_v57  ;;  %v44_v63 = vld [vmem:[%s1352_s0 + $0xd0] sm:$0xff] }
  0x1a   :  { %v62_v62 = vpack.c.bf16 %v43_v60, %v42_v59  ;;  %v45_v0 = vld [vmem:[%s1352_s0 + $0xd8] sm:$0xff]  ;;  %v46_v1 = vld [vmem:[%s1352_s0 + $0xe0] sm:$0xff]  ;;  %v47_v2 = vld [vmem:[%s1352_s0 + $0xe8] sm:$0xff] }
  0x1b   :  { %986 = vmatpush3.bf16.msra.mxu1 %v314_v35  ;;  %934 = vmatpush3.bf16.msra.mxu0 %v314_v35  ;;  %v63_v3 = vpack.c.bf16 %v45_v0, %v44_v63  ;;  %v64_v4 = vpack.c.bf16 %v47_v2, %v46_v1  ;;  %v48_v5 = vld [vmem:[%s1352_s0 + $0xf0] sm:$0xff]  ;;  %v49_v6 = vld [vmem:[%s1352_s0 + $0xf8] sm:$0xff]  ;;  %s1018_s0 = smov [#allocation2]  }
  0x1c   :  { %979 = vmatprep.subr.bf16.mxu1 %v315_v42  ;;  %935 = vmatprep.subr.bf16.mxu0 %v315_v42  ;;  %v65_v7 = vpack.c.bf16 %v49_v6, %v48_v5  ;;  %v309_v8 = vld [vmem:[%s1354_s2 + $0x70] sm:$0xff]  ;;  %v310_v9 = vld [vmem:[%s1354_s2 + $0x78] sm:$0xff]  ;;  %s662_s2 = sshll.u32 %s1018_s0, 4  ;;  %s663_s2 = int_to_ptr.vmem [resolvable:$true] %s662_s2 }
  0x1d   :  { %v318_v10 = vpack.c.bf16 %v310_v9, %v309_v8  ;;  %s994_s7 = scalar_lea.vmem %s663_s2, 2048  ;;  %p999_p1 = scmp.lt.s32.totalorder %s663_s2, %s663_s2 }
  0x1e   :  { %p995_p0 = scmp.ne.s32.totalorder %s663_s2, %s994_s7  ;;  %p1000_p2 = scmp.lt.s32.totalorder %s994_s7, %s994_s7 }
  0x1f   :  { %987 = vmatpush3.bf16.msra.mxu1 %v315_v42  ;;  %936 = vmatpush3.bf16.msra.mxu0 %v315_v42 }
  0x20   :  { %908 = vmatmul.mubr.msk.bf16.gmra.mrb[12].mxu0 %vm69_vm0, %v57_v45  ;;  %937 = vmatprep.subr.bf16.mxu0 %v316_v47  ;;  %p1001_p3 = por %p1000_p2, %p999_p1 }
  0x21   :  { %911 = vmatprep.mubr.msk.bf16.mxu0 %vm69_vm0, %v58_v46  ;;  %980 = vmatprep.subr.bf16.mxu1 %v316_v47 }
  0x22   :  { %p1002_p4 = pnand %p1001_p3, %p995_p0 }
  0x23   :  { %988 = vmatpush3.bf16.msra.mxu1 %v316_v47  ;;  %938 = vmatpush3.bf16.msra.mxu0 %v316_v47 }
  0x24   :  { %981 = vmatprep.subr.bf16.mxu1 %v317_v54  ;;  %939 = vmatprep.subr.bf16.mxu0 %v317_v54 }
  0x27   :  { %989 = vmatpush3.bf16.msra.mxu1 %v317_v54  ;;  %940 = vmatpush3.bf16.msra.mxu0 %v317_v54 }
  0x28   :  { %912 = vmatmul.mubr.msk.bf16.gmra.mrb[16].mxu0 %vm69_vm0, %v59_v55  ;;  %941 = vmatprep.subr.bf16.mxu0 %v318_v10 }
  0x29   :  { %915 = vmatprep.mubr.msk.bf16.mxu0 %vm69_vm0, %v60_v56  ;;  %982 = vmatprep.subr.bf16.mxu1 %v318_v10 }
  0x2b   :  { %942 = vmatpush3.bf16.msra.mxu0 %v318_v10  ;;  %990 = vmatpush3.bf16.msra.mxu1 %v318_v10 }
  0x30   :  { %916 = vmatmul.mubr.msk.bf16.gmra.mrb[20].mxu0 %vm69_vm0, %v61_v61 }
  0x31   :  { %919 = vmatprep.mubr.msk.bf16.mxu0 %vm69_vm0, %v62_v62 }
  0x38   :  { %920 = vmatmul.mubr.msk.bf16.gmra.mrb[24].mxu0 %vm69_vm0, %v63_v3 }
  0x39   :  { %923 = vmatprep.mubr.msk.bf16.mxu0 %vm69_vm0, %v64_v4 }
  0x40   :  { %924 = vmatmul.mubr.msk.bf16.gmra.mrb[28].mxu0 %vm69_vm0, %v65_v7 }
  0xdb   :  { %v897_v11 = vpop.f32.mrb[0].mxu0 }
  0xdc   :  { %v152_v12 = vpop.f32.mrb[1].mxu0 }
  0xdd   :  { %v898_v13 = vpop.f32.mrb[2].mxu0 }
  0xde   :  { %v280_v14 = vpack.c.bf16 %v898_v13, %v897_v11  ;;  %v155_v15 = vpop.f32.mrb[3].mxu0 }
  0xdf   :  { %v279_v16 = vpack.c.bf16 %v155_v15, %v152_v12 }
  0xe0   :  { %837 = vst [vmem:[#allocation2 + $0x8] sm:$0xff] %v280_v14  }
  0xe1   :  { %761 = vst [vmem:[#allocation2] sm:$0xff] %v279_v16   ;;  %943 = vmatprep.mubr.bf16.mxu0 %v279_v16 }
  0xe2   :  { %944 = vmatmul.mubr.bf16.vlgmr.msra.gmra.mrb[32].mxu0 %v280_v14 }
  0xe3   :  { %v901_v17 = vpop.f32.mrb[4].mxu0 }
  0xe4   :  { %v168_v18 = vpop.f32.mrb[5].mxu0 }
  0xe5   :  { %v902_v19 = vpop.f32.mrb[6].mxu0 }
  0xe6   :  { %v282_v20 = vpack.c.bf16 %v902_v19, %v901_v17  ;;  %v171_v21 = vpop.f32.mrb[7].mxu0 }
  0xe7   :  { %v281_v22 = vpack.c.bf16 %v171_v21, %v168_v18 }
  0xe8   :  { %839 = vst [vmem:[#allocation2 + $0x18] sm:$0xff] %v282_v20  }
  0xe9   :  { %838 = vst [vmem:[#allocation2 + $0x10] sm:$0xff] %v281_v22   ;;  %947 = vmatprep.mubr.bf16.mxu1 %v281_v22 }
  0xea   :  { %948 = vmatmul.mubr.bf16.vlgmr.msra.gmra.mrb[0].mxu1 %v282_v20 }
  0xeb   :  { %v905_v23 = vpop.f32.mrb[8].mxu0 }
  0xec   :  { %v184_v24 = vpop.f32.mrb[9].mxu0 }
  0xed   :  { %v906_v25 = vpop.f32.mrb[10].mxu0 }
  0xee   :  { %v284_v26 = vpack.c.bf16 %v906_v25, %v905_v23  ;;  %v187_v27 = vpop.f32.mrb[11].mxu0 }
  0xef   :  { %v283_v28 = vpack.c.bf16 %v187_v27, %v184_v24 }
  0xf0   :  { %841 = vst [vmem:[#allocation2 + $0x28] sm:$0xff] %v284_v26  }
  0xf1   :  { %840 = vst [vmem:[#allocation2 + $0x20] sm:$0xff] %v283_v28   ;;  %951 = vmatprep.mubr.bf16.mxu1 %v283_v28 }
  0xf2   :  { %952 = vmatmul.mubr.bf16.gmra.mrb[4].mxu1 %v284_v26 }
  0xf3   :  { %v909_v29 = vpop.f32.mrb[12].mxu0 }
  0xf4   :  { %v200_v30 = vpop.f32.mrb[13].mxu0 }
  0xf5   :  { %v910_v31 = vpop.f32.mrb[14].mxu0 }
  0xf6   :  { %v286_v32 = vpack.c.bf16 %v910_v31, %v909_v29  ;;  %v203_v33 = vpop.f32.mrb[15].mxu0 }
  0xf7   :  { %v285_v34 = vpack.c.bf16 %v203_v33, %v200_v30 }
  0xf8   :  { %843 = vst [vmem:[#allocation2 + $0x38] sm:$0xff] %v286_v32  }
  0xf9   :  { %842 = vst [vmem:[#allocation2 + $0x30] sm:$0xff] %v285_v34   ;;  %955 = vmatprep.mubr.bf16.mxu1 %v285_v34 }
  0xfa   :  { %956 = vmatmul.mubr.bf16.gmra.mrb[8].mxu1 %v286_v32 }
  0xfb   :  { %v913_v35 = vpop.f32.mrb[16].mxu0 }
  0xfc   :  { %v216_v36 = vpop.f32.mrb[17].mxu0 }
  0xfd   :  { %v914_v37 = vpop.f32.mrb[18].mxu0 }
  0xfe   :  { %v288_v38 = vpack.c.bf16 %v914_v37, %v913_v35  ;;  %v219_v39 = vpop.f32.mrb[19].mxu0 }
  0xff   :  { %v287_v40 = vpack.c.bf16 %v219_v39, %v216_v36 }
 0x100   :  { %845 = vst [vmem:[#allocation2 + $0x48] sm:$0xff] %v288_v38  }
 0x101   :  { %844 = vst [vmem:[#allocation2 + $0x40] sm:$0xff] %v287_v40   ;;  %959 = vmatprep.mubr.bf16.mxu1 %v287_v40 }
 0x102   :  { %960 = vmatmul.mubr.bf16.gmra.mrb[12].mxu1 %v288_v38 }
 0x103   :  { %v917_v41 = vpop.f32.mrb[20].mxu0 }
 0x104   :  { %v232_v42 = vpop.f32.mrb[21].mxu0 }
 0x105   :  { %v918_v43 = vpop.f32.mrb[22].mxu0 }
 0x106   :  { %v290_v44 = vpack.c.bf16 %v918_v43, %v917_v41  ;;  %v235_v45 = vpop.f32.mrb[23].mxu0 }
 0x107   :  { %v289_v46 = vpack.c.bf16 %v235_v45, %v232_v42 }
 0x108   :  { %847 = vst [vmem:[#allocation2 + $0x58] sm:$0xff] %v290_v44  }
 0x109   :  { %846 = vst [vmem:[#allocation2 + $0x50] sm:$0xff] %v289_v46   ;;  %963 = vmatprep.mubr.bf16.mxu1 %v289_v46 }
 0x10a   :  { %964 = vmatmul.mubr.bf16.gmra.mrb[16].mxu1 %v290_v44 }
 0x10b   :  { %v921_v47 = vpop.f32.mrb[24].mxu0 }
 0x10c   :  { %v248_v48 = vpop.f32.mrb[25].mxu0 }
 0x10d   :  { %v922_v49 = vpop.f32.mrb[26].mxu0 }
 0x10e   :  { %v292_v50 = vpack.c.bf16 %v922_v49, %v921_v47  ;;  %v251_v51 = vpop.f32.mrb[27].mxu0 }
 0x10f   :  { %v291_v52 = vpack.c.bf16 %v251_v51, %v248_v48 }
 0x110   :  { %849 = vst [vmem:[#allocation2 + $0x68] sm:$0xff] %v292_v50  }
 0x111   :  { %848 = vst [vmem:[#allocation2 + $0x60] sm:$0xff] %v291_v52   ;;  %967 = vmatprep.mubr.bf16.mxu1 %v291_v52 }
 0x112   :  { %968 = vmatmul.mubr.bf16.gmra.mrb[20].mxu1 %v292_v50 }
 0x113   :  { %v925_v53 = vpop.f32.mrb[28].mxu0 }
 0x114   :  { %v264_v54 = vpop.f32.mrb[29].mxu0 }
 0x115   :  { %v926_v55 = vpop.f32.mrb[30].mxu0 }
 0x116   :  { %v294_v56 = vpack.c.bf16 %v926_v55, %v925_v53  ;;  %v267_v57 = vpop.f32.mrb[31].mxu0 }
 0x117   :  { %v293_v58 = vpack.c.bf16 %v267_v57, %v264_v54 }
 0x118   :  { %851 = vst [vmem:[#allocation2 + $0x78] sm:$0xff] %v294_v56  }
 0x119   :  { %850 = vst [vmem:[#allocation2 + $0x70] sm:$0xff] %v293_v58   ;;  %971 = vmatprep.mubr.bf16.mxu1 %v293_v58 }
 0x11a   :  { %972 = vmatmul.mubr.bf16.gmra.mrb[24].mxu1 %v294_v56 }
 0x11b   :  { %1005 = shalt.err (!%p1002_p4)
}
 0x11c   :  { %s1006_s10 = scalar_lea.hbm %s1355_s3, 2048 }
 0x11d   :  { %p1007_p5 = scmp.ne.s32.totalorder %s1355_s3, %s1006_s10  ;;  %p1010_p6 = scmp.lt.u32.totalorder %s1006_s10, %s1355_s3 }
 0x11f   :  { %p1012_p7 = pnand %p1010_p6, %p1007_p5 }
 0x121   :  { %1015 = shalt.err (!%p1012_p7)
}
 0x122   :  { %s1019_s15 = smov 64   ;;  %s1020_s16 = smov 4   ;;  %vm480_vm1 = vcmask 15360  }
 0x123   :  { %668 = dma.vmem_to_hbm [thread:$0]  %s663_s2, 2048, %s1355_s3, [#allocation3], %s1019_s15, %s1019_s15, %s1020_s16  }
 0x1b5   :  { %v945_v59 = vpop.f32.mrb[32].mxu0 }
 0x1b6   :  { %483 = vst.msk [vmem:[%s1356_s4 + $0x10] sm:$0xff] %vm480_vm1, %v945_v59  ;;  %v353_v60 = vpop.f32.mrb[33].mxu0 }
 0x1b7   :  { %481 = vst.msk [vmem:[%s1356_s4] sm:$0xff] %vm480_vm1, %v353_v60  ;;  %v946_v61 = vpop.f32.mrb[34].mxu0 }
 0x1b8   :  { %484 = vst.msk [vmem:[%s1356_s4 + $0x18] sm:$0xff] %vm480_vm1, %v946_v61  ;;  %v356_v62 = vpop.f32.mrb[35].mxu0 }
 0x1b9   :  { %482 = vst.msk [vmem:[%s1356_s4 + $0x8] sm:$0xff] %vm480_vm1, %v356_v62 }
 0x1bd   :  { %v949_v63 = vpop.f32.mrb[0].mxu1 }
 0x1be   :  { %487 = vst.msk [vmem:[%s1356_s4 + $0x30] sm:$0xff] %vm480_vm1, %v949_v63  ;;  %v369_v0 = vpop.f32.mrb[1].mxu1 }
 0x1bf   :  { %485 = vst.msk [vmem:[%s1356_s4 + $0x20] sm:$0xff] %vm480_vm1, %v369_v0  ;;  %v950_v1 = vpop.f32.mrb[2].mxu1 }
 0x1c0   :  { %488 = vst.msk [vmem:[%s1356_s4 + $0x38] sm:$0xff] %vm480_vm1, %v950_v1  ;;  %v372_v2 = vpop.f32.mrb[3].mxu1 }
 0x1c1   :  { %486 = vst.msk [vmem:[%s1356_s4 + $0x28] sm:$0xff] %vm480_vm1, %v372_v2 }
 0x1c5   :  { %v953_v3 = vpop.f32.mrb[4].mxu1 }
 0x1c6   :  { %491 = vst.msk [vmem:[%s1356_s4 + $0x50] sm:$0xff] %vm480_vm1, %v953_v3  ;;  %v385_v4 = vpop.f32.mrb[5].mxu1 }
 0x1c7   :  { %489 = vst.msk [vmem:[%s1356_s4 + $0x40] sm:$0xff] %vm480_vm1, %v385_v4  ;;  %v954_v5 = vpop.f32.mrb[6].mxu1 }
 0x1c8   :  { %492 = vst.msk [vmem:[%s1356_s4 + $0x58] sm:$0xff] %vm480_vm1, %v954_v5  ;;  %v388_v6 = vpop.f32.mrb[7].mxu1 }
 0x1c9   :  { %490 = vst.msk [vmem:[%s1356_s4 + $0x48] sm:$0xff] %vm480_vm1, %v388_v6 }
 0x1cd   :  { %v957_v7 = vpop.f32.mrb[8].mxu1 }
 0x1ce   :  { %495 = vst.msk [vmem:[%s1356_s4 + $0x70] sm:$0xff] %vm480_vm1, %v957_v7  ;;  %v401_v8 = vpop.f32.mrb[9].mxu1 }
 0x1cf   :  { %493 = vst.msk [vmem:[%s1356_s4 + $0x60] sm:$0xff] %vm480_vm1, %v401_v8  ;;  %v958_v9 = vpop.f32.mrb[10].mxu1 }
 0x1d0   :  { %496 = vst.msk [vmem:[%s1356_s4 + $0x78] sm:$0xff] %vm480_vm1, %v958_v9  ;;  %v404_v10 = vpop.f32.mrb[11].mxu1 }
 0x1d1   :  { %494 = vst.msk [vmem:[%s1356_s4 + $0x68] sm:$0xff] %vm480_vm1, %v404_v10 }
 0x1d5   :  { %v961_v11 = vpop.f32.mrb[12].mxu1 }
 0x1d6   :  { %499 = vst.msk [vmem:[%s1356_s4 + $0x90] sm:$0xff] %vm480_vm1, %v961_v11  ;;  %v417_v12 = vpop.f32.mrb[13].mxu1 }
 0x1d7   :  { %497 = vst.msk [vmem:[%s1356_s4 + $0x80] sm:$0xff] %vm480_vm1, %v417_v12  ;;  %v962_v13 = vpop.f32.mrb[14].mxu1 }
 0x1d8   :  { %500 = vst.msk [vmem:[%s1356_s4 + $0x98] sm:$0xff] %vm480_vm1, %v962_v13  ;;  %v420_v14 = vpop.f32.mrb[15].mxu1 }
 0x1d9   :  { %498 = vst.msk [vmem:[%s1356_s4 + $0x88] sm:$0xff] %vm480_vm1, %v420_v14 }
 0x1dd   :  { %v965_v15 = vpop.f32.mrb[16].mxu1 }
 0x1de   :  { %503 = vst.msk [vmem:[%s1356_s4 + $0xb0] sm:$0xff] %vm480_vm1, %v965_v15  ;;  %v433_v16 = vpop.f32.mrb[17].mxu1 }
 0x1df   :  { %501 = vst.msk [vmem:[%s1356_s4 + $0xa0] sm:$0xff] %vm480_vm1, %v433_v16  ;;  %v966_v17 = vpop.f32.mrb[18].mxu1 }
 0x1e0   :  { %504 = vst.msk [vmem:[%s1356_s4 + $0xb8] sm:$0xff] %vm480_vm1, %v966_v17  ;;  %v436_v18 = vpop.f32.mrb[19].mxu1 }
 0x1e1   :  { %502 = vst.msk [vmem:[%s1356_s4 + $0xa8] sm:$0xff] %vm480_vm1, %v436_v18 }
 0x1e5   :  { %v969_v19 = vpop.f32.mrb[20].mxu1 }
 0x1e6   :  { %507 = vst.msk [vmem:[%s1356_s4 + $0xd0] sm:$0xff] %vm480_vm1, %v969_v19  ;;  %v449_v20 = vpop.f32.mrb[21].mxu1 }
 0x1e7   :  { %505 = vst.msk [vmem:[%s1356_s4 + $0xc0] sm:$0xff] %vm480_vm1, %v449_v20  ;;  %v970_v21 = vpop.f32.mrb[22].mxu1 }
 0x1e8   :  { %508 = vst.msk [vmem:[%s1356_s4 + $0xd8] sm:$0xff] %vm480_vm1, %v970_v21  ;;  %v452_v22 = vpop.f32.mrb[23].mxu1 }
 0x1e9   :  { %506 = vst.msk [vmem:[%s1356_s4 + $0xc8] sm:$0xff] %vm480_vm1, %v452_v22 }
 0x1ed   :  { %v973_v23 = vpop.f32.mrb[24].mxu1 }
 0x1ee   :  { %511 = vst.msk [vmem:[%s1356_s4 + $0xf0] sm:$0xff] %vm480_vm1, %v973_v23  ;;  %v465_v24 = vpop.f32.mrb[25].mxu1 }
 0x1ef   :  { %509 = vst.msk [vmem:[%s1356_s4 + $0xe0] sm:$0xff] %vm480_vm1, %v465_v24  ;;  %v974_v25 = vpop.f32.mrb[26].mxu1 }
 0x1f0   :  { %512 = vst.msk [vmem:[%s1356_s4 + $0xf8] sm:$0xff] %vm480_vm1, %v974_v25  ;;  %v468_v26 = vpop.f32.mrb[27].mxu1 }
 0x1f1   :  { %510 = vst.msk [vmem:[%s1356_s4 + $0xe8] sm:$0xff] %vm480_vm1, %v468_v26 }
 0x1f2   :  { %1016 = dma.done.wait [#allocation3], 2048  }
 0x1f3   :  { %1017 = vsyncadd [#allocation3], 4294965248 }
 0x1f4   :  { %676 = vsyncpa [#allocation3], 1 }

</bundles_post_ra>
